<compile_context>
chip_gen: v7x
topology: tpu7x:2x2x1
jax: 0.10.0
libtpu: 0.0.40
codegen_flags: <defaults>
</compile_context>

<pallas_src>
import functools

import jax
import jax.numpy as jnp
import numpy as np
from jax.experimental import pallas as pl
from jax.experimental.pallas import tpu as pltpu

FPAD = 128            # lane-dense padded feature width (vreg lane count)
DST_COL = FPAD - 2    # W_aug column holding W @ att_dst
SRC_COL = FPAD - 1    # W_aug column holding W @ att_src
NEG_SLOPE = 0.2
MASK_VAL = -1e30      # additive mask for missing edges (bf16-representable)


def _round_up(n, m):
    return (n + m - 1) // m * m


# ----------------------------- Pallas kernels -------------------------------
def _linear_kernel(x_ref, w_ref, out_ref, *, relu):
    """out = (relu?)(x) @ W_aug, bf16 MXU operands, f32 accumulate, bf16 out."""
    x = x_ref[...]
    if relu:
        x = jnp.maximum(x, 0.0)
    out_ref[...] = jnp.dot(
        x.astype(jnp.bfloat16), w_ref[...],
        preferred_element_type=jnp.float32).astype(jnp.bfloat16)


def linear(x, w_aug, *, relu, tm):
    n_pad = x.shape[0]
    nt = n_pad // tm
    return pl.pallas_call(
        functools.partial(_linear_kernel, relu=relu),
        out_shape=jax.ShapeDtypeStruct((n_pad, FPAD), jnp.bfloat16),
        grid=(nt,),
        in_specs=[
            pl.BlockSpec((tm, FPAD), lambda i: (i, 0)),     # node-feature rows
            pl.BlockSpec((FPAD, FPAD), lambda i: (0, 0)),   # W_aug (resident)
        ],
        out_specs=pl.BlockSpec((tm, FPAD), lambda i: (i, 0)),
        compiler_params=pltpu.CompilerParams(
            dimension_semantics=("parallel",)),
    )(x, w_aug)


def _attn_agg_kernel(h_tile_ref, h_full_ref, adjb_ref, b_ref, out_ref):
    """One target-row tile of masked-softmax attention + aggregation."""
    # Attention coefficients read straight out of the augmented h columns.
    a_dst = h_tile_ref[:, DST_COL:DST_COL + 1].astype(jnp.float32)   # [TM, 1]
    a_src = h_full_ref[:, SRC_COL:SRC_COL + 1].astype(jnp.float32)   # [Np, 1]
    raw = a_dst + jnp.transpose(a_src)                                # [TM, Np]
    # leaky_relu + additive adjacency mask (bf16 ref promotes per-vreg).
    e = jnp.where(raw >= 0, raw, NEG_SLOPE * raw) + adjb_ref[...]
    # Row softmax over sources; masked entries underflow to exactly 0.
    e_max = jnp.max(e, axis=-1, keepdims=True)
    p = jnp.exp(e - e_max)
    denom = jnp.sum(p, axis=-1, keepdims=True)
    # Aggregate with un-normalised p (bf16 MXU LHS); normalise the small
    # [TM, FPAD] result instead of the [TM, Np] matrix.
    agg = jnp.dot(p.astype(jnp.bfloat16), h_full_ref[...],
                  preferred_element_type=jnp.float32)                 # [TM, FPAD]
    out_ref[...] = agg * pl.reciprocal(denom, approx=False) + b_ref[...]


def attn_agg(h_aug, adj_bias, bias, *, tm):
    n_pad = h_aug.shape[0]
    nt = n_pad // tm
    # Note: TM should be shrunk (~2x) on v7x (64 MiB VMEM) for large graphs;
    # at demo size everything fits comfortably in the default scoped VMEM.
    return pl.pallas_call(
        _attn_agg_kernel,
        out_shape=jax.ShapeDtypeStruct((n_pad, FPAD), jnp.float32),
        grid=(nt,),
        in_specs=[
            pl.BlockSpec((tm, FPAD), lambda i: (i, 0)),      # h rows -> a_dst
            pl.BlockSpec((n_pad, FPAD), lambda i: (0, 0)),   # full h (resident sources)
            pl.BlockSpec((tm, n_pad), lambda i: (i, 0)),     # adjacency bias rows (streamed)
            pl.BlockSpec((1, FPAD), lambda i: (0, 0)),       # layer bias
        ],
        out_specs=pl.BlockSpec((tm, FPAD), lambda i: (i, 0)),
        compiler_params=pltpu.CompilerParams(
            dimension_semantics=("parallel",)),
    )(h_aug, h_aug, adj_bias, bias)


# ------------------------- host-side preparation ----------------------------
def build_dense_adj(edge_index, num_nodes):
    # adj[target, source] = 1 for every edge, plus self loops (PyG default).
    src, dst = edge_index[0], edge_index[1]
    adj = jnp.zeros((num_nodes, num_nodes), jnp.float32).at[dst, src].set(1.0)
    return jnp.maximum(adj, jnp.eye(num_nodes, dtype=jnp.float32))


def adj_to_additive_bias(adj, n_pad):
    # 0 for edges, -1e30 elsewhere (incl. all padded rows/cols), bf16.
    n = adj.shape[0]
    bias = jnp.full((n_pad, n_pad), MASK_VAL, jnp.float32)
    bias = bias.at[:n, :n].set(jnp.where(adj > 0, 0.0, MASK_VAL))
    return bias.astype(jnp.bfloat16)


def init_gatconv_params(key, in_dim, out_dim):
    k1, k2, k3 = jax.random.split(key, 3)
    w = jax.random.normal(k1, (in_dim, out_dim), jnp.float32) * 0.1
    att_src = jax.random.normal(k2, (out_dim,), jnp.float32) * 0.1
    att_dst = jax.random.normal(k3, (out_dim,), jnp.float32) * 0.1
    bias = jnp.zeros((out_dim,), jnp.float32)
    return w, att_src, att_dst, bias


def pad_gatconv_params(w, att_src, att_dst, bias):
    # Fold att into W: columns DST_COL / SRC_COL carry W@att_dst / W@att_src,
    # so a_dst/a_src come out of the single linear matmul.
    in_dim, out_dim = w.shape
    assert out_dim <= DST_COL, "out_dim must leave room for the att columns"
    w_aug = jnp.zeros((FPAD, FPAD), jnp.float32)
    w_aug = w_aug.at[:in_dim, :out_dim].set(w)
    w_aug = w_aug.at[:in_dim, DST_COL].set(w @ att_dst)
    w_aug = w_aug.at[:in_dim, SRC_COL].set(w @ att_src)
    b_pad = jnp.zeros((1, FPAD), jnp.float32).at[0, :out_dim].set(bias)
    return w_aug.astype(jnp.bfloat16), b_pad


@functools.partial(jax.jit, static_argnames=("hid_dim", "out_dim", "tm"))
def gat_forward(x, adj_bias, p1, p2, *, hid_dim, out_dim, tm):
    n, in_dim = x.shape
    n_pad = adj_bias.shape[0]
    x_pad = jnp.zeros((n_pad, FPAD), jnp.bfloat16).at[:n, :in_dim].set(
        x.astype(jnp.bfloat16))
    w1, b1 = p1
    w2, b2 = p2
    h1 = linear(x_pad, w1, relu=False, tm=tm)        # conv1 linear (bf16)
    x1 = attn_agg(h1, adj_bias, b1, tm=tm)           # conv1 attention (f32)
    h2 = linear(x1, w2, relu=True, tm=tm)            # relu fused into conv2 linear
    x2 = attn_agg(h2, adj_bias, b2, tm=tm)           # conv2 attention (f32)
    h_out = jnp.maximum(x1, 0.0)                     # dropout(0.3) = identity (eval)
    return x2[:n, :out_dim], h_out[:n, :hid_dim]


# ------------------------- pure-JAX reference -------------------------------
def _gat_conv_ref(x, w, att_src, att_dst, bias, adj):
    h = x @ w
    a_src = h @ att_src
    a_dst = h @ att_dst
    e = a_dst[:, None] + a_src[None, :]
    e = jnp.where(e >= 0, e, NEG_SLOPE * e)
    e = jnp.where(adj > 0, e, -jnp.inf)
    alpha = jax.nn.softmax(e, axis=-1)
    return alpha @ h + bias[None, :]


def _gat_forward_ref(x, adj, params1, params2):
    x1 = _gat_conv_ref(x, *params1, adj)
    h = jnp.maximum(x1, 0.0)
    x2 = _gat_conv_ref(h, *params2, adj)
    return x2, h


if __name__ == "__main__":
    N = 16          # number of graph nodes
    IN_DIM = 8
    HID_DIM = 32
    OUT_DIM = 8

    key = jax.random.PRNGKey(0)
    kx, kp1, kp2 = jax.random.split(key, 3)

    # node features [N, IN_DIM]
    x = jax.random.normal(kx, (N, IN_DIM), jnp.float32)

    # deterministic small graph: bidirectional ring
    src = jnp.arange(N, dtype=jnp.int32)
    dst = (src + 1) % N
    edge_index = jnp.concatenate(
        [jnp.stack([src, dst], axis=0), jnp.stack([dst, src], axis=0)], axis=1
    )  # [2, 2N]
    adj = build_dense_adj(edge_index, N)

    n_pad = _round_up(N, 128)            # lane-dense node padding
    tm = min(128, n_pad)                 # target-row tile
    adj_bias = adj_to_additive_bias(adj, n_pad)

    params1 = init_gatconv_params(kp1, IN_DIM, HID_DIM)
    params2 = init_gatconv_params(kp2, HID_DIM, OUT_DIM)
    p1 = pad_gatconv_params(*params1)
    p2 = pad_gatconv_params(*params2)

    x_out, h_out = gat_forward(x, adj_bias, p1, p2,
                               hid_dim=HID_DIM, out_dim=OUT_DIM, tm=tm)
    jax.block_until_ready((x_out, h_out))

    assert x_out.shape == (N, OUT_DIM)
    assert h_out.shape == (N, HID_DIM)

    # correctness vs. pure-JAX f32 reference (bf16 MXU operands -> ~1% rel err)
    x_ref, h_ref = _gat_forward_ref(x, adj, params1, params2)
    np.testing.assert_allclose(np.asarray(x_out), np.asarray(x_ref),
                               rtol=2e-2, atol=2e-2)
    np.testing.assert_allclose(np.asarray(h_out), np.asarray(h_ref),
                               rtol=2e-2, atol=2e-2)

    print("KERNEL_OK")
</pallas_src>

<mosaic_0001>
module attributes {stable_mosaic.version = 11 : i64} {
  func.func @_linear_kernel(%arg0: i32, %arg1: memref<128x128xbf16, #tpu.memory_space<vmem>>, %arg2: memref<128x128xbf16, #tpu.memory_space<vmem>>, %arg3: memref<128x128xbf16, #tpu.memory_space<vmem>>) attributes {dimension_semantics = [#tpu.dimension_semantics<parallel>], iteration_bounds = array<i64: 1>, scalar_prefetch = 0 : i64, scratch_operands = 0 : i64, tpu.core_type = #tpu.core_type<tc>, window_params = [{transform_indices = @transform_0, window_bounds = array<i64: 128, 128>}, {pipeline_mode = #tpu.pipeline_mode<synchronous>, transform_indices = @transform_1, window_bounds = array<i64: 128, 128>}, {transform_indices = @transform_2, window_bounds = array<i64: 128, 128>}]} {
    %c0 = arith.constant 0 : index
    %c0_0 = arith.constant 0 : index
    %0 = vector.load %arg1[%c0, %c0_0] : memref<128x128xbf16, #tpu.memory_space<vmem>>, vector<128x128xbf16>
    %c0_1 = arith.constant 0 : index
    %c0_2 = arith.constant 0 : index
    %1 = vector.load %arg2[%c0_1, %c0_2] : memref<128x128xbf16, #tpu.memory_space<vmem>>, vector<128x128xbf16>
    %cst = arith.constant dense<0.000000e+00> : vector<128x128xf32>
    %2 = tpu.matmul %0, %1, %cst {dimension_numbers = #tpu.dot_dimension_numbers<[1], [0], [0], [1], [0, 0, 1, 1], [], []>} : vector<128x128xbf16>, vector<128x128xbf16>, vector<128x128xf32> -> vector<128x128xf32>
    %3 = arith.truncf %2 : vector<128x128xf32> to vector<128x128xbf16>
    %c0_3 = arith.constant 0 : index
    %c0_4 = arith.constant 0 : index
    %4 = vector.load %arg3[%c0_3, %c0_4] : memref<128x128xbf16, #tpu.memory_space<vmem>>, vector<128x128xbf16>
    tpu.vector_store %arg3[%c0_3, %c0_4], %3 {strides = array<i32>} : memref<128x128xbf16, #tpu.memory_space<vmem>>, vector<128x128xbf16>,
    return
  }
  func.func @transform_0(%arg0: i32) -> (i32, i32) {
    %c0_i32 = arith.constant 0 : i32
    %c0_i32_0 = arith.constant 0 : i32
    return %arg0, %c0_i32 : i32, i32
  }
  func.func @transform_1(%arg0: i32) -> (i32, i32) {
    %c0_i32 = arith.constant 0 : i32
    %c0_i32_0 = arith.constant 0 : i32
    %c0_i32_1 = arith.constant 0 : i32
    return %c0_i32, %c0_i32_0 : i32, i32
  }
  func.func @transform_2(%arg0: i32) -> (i32, i32) {
    %c0_i32 = arith.constant 0 : i32
    %c0_i32_0 = arith.constant 0 : i32
    return %arg0, %c0_i32 : i32, i32
  }
}

module attributes {stable_mosaic.version = 11 : i64} {
  func.func @_linear_kernel(%arg0: i32, %arg1: memref<128x128xf32, #tpu.memory_space<vmem>>, %arg2: memref<128x128xbf16, #tpu.memory_space<vmem>>, %arg3: memref<128x128xbf16, #tpu.memory_space<vmem>>) attributes {dimension_semantics = [#tpu.dimension_semantics<parallel>], iteration_bounds = array<i64: 1>, scalar_prefetch = 0 : i64, scratch_operands = 0 : i64, tpu.core_type = #tpu.core_type<tc>, window_params = [{transform_indices = @transform_0, window_bounds = array<i64: 128, 128>}, {pipeline_mode = #tpu.pipeline_mode<synchronous>, transform_indices = @transform_1, window_bounds = array<i64: 128, 128>}, {transform_indices = @transform_2, window_bounds = array<i64: 128, 128>}]} {
    %c0 = arith.constant 0 : index
    %c0_0 = arith.constant 0 : index
    %0 = vector.load %arg1[%c0, %c0_0] : memref<128x128xf32, #tpu.memory_space<vmem>>, vector<128x128xf32>
    %cst = arith.constant 0.000000e+00 : f32
    %1 = vector.broadcast %cst : f32 to vector<128x128xf32>
    %2 = arith.maximumf %0, %1 : vector<128x128xf32>
    %3 = arith.truncf %2 : vector<128x128xf32> to vector<128x128xbf16>
    %c0_1 = arith.constant 0 : index
    %c0_2 = arith.constant 0 : index
    %4 = vector.load %arg2[%c0_1, %c0_2] : memref<128x128xbf16, #tpu.memory_space<vmem>>, vector<128x128xbf16>
    %cst_3 = arith.constant dense<0.000000e+00> : vector<128x128xf32>
    %5 = tpu.matmul %3, %4, %cst_3 {dimension_numbers = #tpu.dot_dimension_numbers<[1], [0], [0], [1], [0, 0, 1, 1], [], []>} : vector<128x128xbf16>, vector<128x128xbf16>, vector<128x128xf32> -> vector<128x128xf32>
    %6 = arith.truncf %5 : vector<128x128xf32> to vector<128x128xbf16>
    %c0_4 = arith.constant 0 : index
    %c0_5 = arith.constant 0 : index
    %7 = vector.load %arg3[%c0_4, %c0_5] : memref<128x128xbf16, #tpu.memory_space<vmem>>, vector<128x128xbf16>
    tpu.vector_store %arg3[%c0_4, %c0_5], %6 {strides = array<i32>} : memref<128x128xbf16, #tpu.memory_space<vmem>>, vector<128x128xbf16>,
    return
  }
  func.func @transform_0(%arg0: i32) -> (i32, i32) {
    %c0_i32 = arith.constant 0 : i32
    %c0_i32_0 = arith.constant 0 : i32
    return %arg0, %c0_i32 : i32, i32
  }
  func.func @transform_1(%arg0: i32) -> (i32, i32) {
    %c0_i32 = arith.constant 0 : i32
    %c0_i32_0 = arith.constant 0 : i32
    %c0_i32_1 = arith.constant 0 : i32
    return %c0_i32, %c0_i32_0 : i32, i32
  }
  func.func @transform_2(%arg0: i32) -> (i32, i32) {
    %c0_i32 = arith.constant 0 : i32
    %c0_i32_0 = arith.constant 0 : i32
    return %arg0, %c0_i32 : i32, i32
  }
}

module attributes {stable_mosaic.version = 11 : i64} {
  func.func @_attn_agg_kernel(%arg0: i32, %arg1: memref<128x128xbf16, #tpu.memory_space<vmem>>, %arg2: memref<128x128xbf16, #tpu.memory_space<vmem>>, %arg3: memref<128x128xbf16, #tpu.memory_space<vmem>>, %arg4: memref<1x128xf32, #tpu.memory_space<vmem>>, %arg5: memref<128x128xf32, #tpu.memory_space<vmem>>) attributes {dimension_semantics = [#tpu.dimension_semantics<parallel>], iteration_bounds = array<i64: 1>, scalar_prefetch = 0 : i64, scratch_operands = 0 : i64, tpu.core_type = #tpu.core_type<tc>, window_params = [{transform_indices = @transform_0, window_bounds = array<i64: 128, 128>}, {pipeline_mode = #tpu.pipeline_mode<synchronous>, transform_indices = @transform_1, window_bounds = array<i64: 128, 128>}, {transform_indices = @transform_2, window_bounds = array<i64: 128, 128>}, {pipeline_mode = #tpu.pipeline_mode<synchronous>, transform_indices = @transform_3, window_bounds = array<i64: 1, 128>}, {transform_indices = @transform_4, window_bounds = array<i64: 128, 128>}]} {
    %c0 = arith.constant 0 : index
    %c126 = arith.constant 126 : index
    %0 = vector.load %arg1[%c0, %c126] : memref<128x128xbf16, #tpu.memory_space<vmem>>, vector<128x1xbf16>
    %1 = arith.extf %0 : vector<128x1xbf16> to vector<128x1xf32>
    %c0_0 = arith.constant 0 : index
    %c127 = arith.constant 127 : index
    %2 = vector.load %arg2[%c0_0, %c127] : memref<128x128xbf16, #tpu.memory_space<vmem>>, vector<128x1xbf16>
    %3 = arith.extf %2 : vector<128x1xbf16> to vector<128x1xf32>
    %4 = tpu.transpose %3, [1, 0] : vector<128x1xf32> -> vector<1x128xf32>
    %5 = vector.broadcast %1 : vector<128x1xf32> to vector<128x128xf32>
    %6 = vector.broadcast %4 : vector<1x128xf32> to vector<128x128xf32>
    %7 = arith.addf %5, %6 : vector<128x128xf32>
    %cst = arith.constant 0.000000e+00 : f32
    %8 = vector.broadcast %cst : f32 to vector<128x128xf32>
    %9 = arith.cmpf oge, %7, %8 : vector<128x128xf32>
    %cst_1 = arith.constant 2.000000e-01 : f32
    %10 = vector.broadcast %cst_1 : f32 to vector<128x128xf32>
    %11 = arith.mulf %10, %7 : vector<128x128xf32>
    %12 = arith.select %9, %7, %11 : vector<128x128xi1>, vector<128x128xf32>
    %c0_2 = arith.constant 0 : index
    %c0_3 = arith.constant 0 : index
    %13 = vector.load %arg3[%c0_2, %c0_3] : memref<128x128xbf16, #tpu.memory_space<vmem>>, vector<128x128xbf16>
    %14 = arith.extf %13 : vector<128x128xbf16> to vector<128x128xf32>
    %15 = arith.addf %12, %14 : vector<128x128xf32>
    %cst_4 = arith.constant dense<0xFF800000> : vector<128xf32>
    %16 = vector.multi_reduction <maximumf>, %15, %cst_4 [1] : vector<128x128xf32> to vector<128xf32>
    %17 = vector.shape_cast %16 : vector<128xf32> to vector<128x1xf32>
    %18 = vector.broadcast %17 : vector<128x1xf32> to vector<128x128xf32>
    %19 = arith.subf %15, %18 : vector<128x128xf32>
    %20 = math.exp %19 : vector<128x128xf32>
    %cst_5 = arith.constant dense<0.000000e+00> : vector<128xf32>
    %21 = vector.multi_reduction <add>, %20, %cst_5 [1] : vector<128x128xf32> to vector<128xf32>
    %22 = vector.shape_cast %21 : vector<128xf32> to vector<128x1xf32>
    %23 = arith.truncf %20 : vector<128x128xf32> to vector<128x128xbf16>
    %c0_6 = arith.constant 0 : index
    %c0_7 = arith.constant 0 : index
    %24 = vector.load %arg2[%c0_6, %c0_7] : memref<128x128xbf16, #tpu.memory_space<vmem>>, vector<128x128xbf16>
    %cst_8 = arith.constant dense<0.000000e+00> : vector<128x128xf32>
    %25 = tpu.matmul %23, %24, %cst_8 {dimension_numbers = #tpu.dot_dimension_numbers<[1], [0], [0], [1], [0, 0, 1, 1], [], []>} : vector<128x128xbf16>, vector<128x128xbf16>, vector<128x128xf32> -> vector<128x128xf32>
    %26 = tpu.reciprocal %22 : vector<128x1xf32> -> vector<128x1xf32>
    %27 = vector.broadcast %26 : vector<128x1xf32> to vector<128x128xf32>
    %28 = arith.mulf %25, %27 : vector<128x128xf32>
    %c0_9 = arith.constant 0 : index
    %c0_10 = arith.constant 0 : index
    %29 = vector.load %arg4[%c0_9, %c0_10] : memref<1x128xf32, #tpu.memory_space<vmem>>, vector<1x128xf32>
    %30 = vector.broadcast %29 : vector<1x128xf32> to vector<128x128xf32>
    %31 = arith.addf %28, %30 : vector<128x128xf32>
    %c0_11 = arith.constant 0 : index
    %c0_12 = arith.constant 0 : index
    %32 = vector.load %arg5[%c0_11, %c0_12] : memref<128x128xf32, #tpu.memory_space<vmem>>, vector<128x128xf32>
    tpu.vector_store %arg5[%c0_11, %c0_12], %31 {strides = array<i32>} : memref<128x128xf32, #tpu.memory_space<vmem>>, vector<128x128xf32>,
    return
  }
  func.func @transform_0(%arg0: i32) -> (i32, i32) {
    %c0_i32 = arith.constant 0 : i32
    %c0_i32_0 = arith.constant 0 : i32
    return %arg0, %c0_i32 : i32, i32
  }
  func.func @transform_1(%arg0: i32) -> (i32, i32) {
    %c0_i32 = arith.constant 0 : i32
    %c0_i32_0 = arith.constant 0 : i32
    %c0_i32_1 = arith.constant 0 : i32
    return %c0_i32, %c0_i32_0 : i32, i32
  }
  func.func @transform_2(%arg0: i32) -> (i32, i32) {
    %c0_i32 = arith.constant 0 : i32
    %c0_i32_0 = arith.constant 0 : i32
    return %arg0, %c0_i32 : i32, i32
  }
  func.func @transform_3(%arg0: i32) -> (i32, i32) {
    %c0_i32 = arith.constant 0 : i32
    %c0_i32_0 = arith.constant 0 : i32
    %c0_i32_1 = arith.constant 0 : i32
    return %c0_i32, %c0_i32_0 : i32, i32
  }
  func.func @transform_4(%arg0: i32) -> (i32, i32) {
    %c0_i32 = arith.constant 0 : i32
    %c0_i32_0 = arith.constant 0 : i32
    return %arg0, %c0_i32 : i32, i32
  }
}

</mosaic_0001>

<bundles_post_ra>
// kernel: gat_forward.4
= control target key start
LH: loop header
LB: loop body
LE: loop exit
PB: predicated region body
PF: predicated region fallthrough
CT: control target
= control target key end

     0   :  { %s583_s1 = inlined_call_operand.vmem [shape: bf16[128,128], index: 1, kind: input, shape index: {}]   ;;  %s584_s0 = inlined_call_operand.vmem [shape: bf16[128,128], index: 0, kind: input, shape index: {}]   ;;  %s585_s2 = inlined_call_operand.vmem [shape: bf16[128,128], index: 2, kind: output, shape index: {}]  }
   0x1   :  { %v480_v0 = vld [vmem:[%s583_s1] sm:$0xff]   ;;  %v481_v1 = vld [vmem:[%s583_s1 + $0x8] sm:$0xff]   ;;  %v482_v2 = vld [vmem:[%s583_s1 + $0x10] sm:$0xff]  }
   0x2   :  { %432 = vmatprep.subr.bf16.mxu0 %v480_v0  ;;  %464 = vmatprep.subr.bf16.mxu1 %v480_v0  ;;  %v483_v3 = vld [vmem:[%s583_s1 + $0x18] sm:$0xff]   ;;  %v488_v4 = vld [vmem:[%s584_s0] sm:$0xff]   ;;  %v485_v7 = vld [vmem:[%s583_s1 + $0x28] sm:$0xff]  }
   0x3   :  { %433 = vmatpush3.bf16.msra.mxu0 %v480_v0  ;;  %472 = vmatpush3.bf16.msra.mxu1 %v480_v0  ;;  %v489_v5 = vld [vmem:[%s584_s0 + $0x20] sm:$0xff]   ;;  %v486_v8 = vld [vmem:[%s583_s1 + $0x30] sm:$0xff]   ;;  %v487_v9 = vld [vmem:[%s583_s1 + $0x38] sm:$0xff]  }
   0x4   :  { %434 = vmatprep.subr.bf16.mxu0 %v481_v1  ;;  %465 = vmatprep.subr.bf16.mxu1 %v481_v1  ;;  %v484_v6 = vld [vmem:[%s583_s1 + $0x20] sm:$0xff]   ;;  %v490_v10 = vld [vmem:[%s584_s0 + $0x8] sm:$0xff]   ;;  %v492_v12 = vld [vmem:[%s584_s0 + $0x10] sm:$0xff]  }
   0x5   :  { %448 = vmatprep.mubr.bf16.mxu0 %v488_v4  ;;  %456 = vmatprep.mubr.bf16.mxu1 %v489_v5  ;;  %v491_v11 = vld [vmem:[%s584_s0 + $0x28] sm:$0xff]   ;;  %v493_v13 = vld [vmem:[%s584_s0 + $0x30] sm:$0xff]   ;;  %v494_v14 = vld [vmem:[%s584_s0 + $0x18] sm:$0xff]  }
   0x6   :  { %v495_v15 = vld [vmem:[%s584_s0 + $0x38] sm:$0xff]  }
   0x7   :  { %435 = vmatpush3.bf16.msra.mxu0 %v481_v1  ;;  %473 = vmatpush3.bf16.msra.mxu1 %v481_v1 }
   0x8   :  { %436 = vmatprep.subr.bf16.mxu0 %v482_v2  ;;  %466 = vmatprep.subr.bf16.mxu1 %v482_v2 }
   0xb   :  { %437 = vmatpush3.bf16.msra.mxu0 %v482_v2  ;;  %474 = vmatpush3.bf16.msra.mxu1 %v482_v2 }
   0xc   :  { %438 = vmatprep.subr.bf16.mxu0 %v483_v3  ;;  %467 = vmatprep.subr.bf16.mxu1 %v483_v3 }
   0xf   :  { %439 = vmatpush3.bf16.msra.mxu0 %v483_v3  ;;  %475 = vmatpush3.bf16.msra.mxu1 %v483_v3 }
  0x10   :  { %440 = vmatprep.subr.bf16.mxu0 %v484_v6  ;;  %468 = vmatprep.subr.bf16.mxu1 %v484_v6 }
  0x13   :  { %441 = vmatpush3.bf16.msra.mxu0 %v484_v6  ;;  %476 = vmatpush3.bf16.msra.mxu1 %v484_v6 }
  0x14   :  { %442 = vmatprep.subr.bf16.mxu0 %v485_v7  ;;  %469 = vmatprep.subr.bf16.mxu1 %v485_v7 }
  0x17   :  { %443 = vmatpush3.bf16.msra.mxu0 %v485_v7  ;;  %477 = vmatpush3.bf16.msra.mxu1 %v485_v7 }
  0x18   :  { %444 = vmatprep.subr.bf16.mxu0 %v486_v8  ;;  %470 = vmatprep.subr.bf16.mxu1 %v486_v8 }
  0x1b   :  { %445 = vmatpush3.bf16.msra.mxu0 %v486_v8  ;;  %478 = vmatpush3.bf16.msra.mxu1 %v486_v8 }
  0x1c   :  { %446 = vmatprep.subr.bf16.mxu0 %v487_v9  ;;  %471 = vmatprep.subr.bf16.mxu1 %v487_v9 }
  0x1f   :  { %447 = vmatpush3.bf16.msra.mxu0 %v487_v9  ;;  %479 = vmatpush3.bf16.msra.mxu1 %v487_v9 }
  0x22   :  { %449 = vmatmul.mubr.bf16.vlgmr.msra.gmra.mrb[0].mxu0 %v490_v10  ;;  %457 = vmatmul.mubr.bf16.vlgmr.msra.gmra.mrb[0].mxu1 %v491_v11 }
  0x23   :  { %452 = vmatprep.mubr.bf16.mxu0 %v492_v12  ;;  %460 = vmatprep.mubr.bf16.mxu1 %v493_v13 }
  0x2a   :  { %453 = vmatmul.mubr.bf16.gmra.mrb[4].mxu0 %v494_v14  ;;  %461 = vmatmul.mubr.bf16.gmra.mrb[4].mxu1 %v495_v15 }
  0xf5   :  { %v450_v16 = vpop.f32.mrb[0].mxu0  ;;  %v458_v17 = vpop.f32.mrb[0].mxu1 }
  0xf6   :  { %v174_v18 = vpop.f32.mrb[1].mxu0  ;;  %v206_v19 = vpop.f32.mrb[1].mxu1 }
  0xf7   :  { %v451_v20 = vpop.f32.mrb[2].mxu0  ;;  %v459_v21 = vpop.f32.mrb[2].mxu1 }
  0xf8   :  { %v377_v22 = vpack.c.bf16 %v451_v20, %v450_v16  ;;  %v397_v23 = vpack.c.bf16 %v459_v21, %v458_v17  ;;  %v177_v24 = vpop.f32.mrb[3].mxu0  ;;  %v209_v25 = vpop.f32.mrb[3].mxu1 }
  0xf9   :  { %v372_v26 = vpack.c.bf16 %v177_v24, %v174_v18  ;;  %v392_v27 = vpack.c.bf16 %v209_v25, %v206_v19 }
  0xfa   :  { %409 = vst [vmem:[%s585_s2 + $0x8] sm:$0xff] %v377_v22   ;;  %413 = vst [vmem:[%s585_s2 + $0x28] sm:$0xff] %v397_v23  }
  0xfb   :  { %373 = vst [vmem:[%s585_s2] sm:$0xff] %v372_v26   ;;  %412 = vst [vmem:[%s585_s2 + $0x20] sm:$0xff] %v392_v27  }
  0xfd   :  { %v454_v28 = vpop.f32.mrb[4].mxu0  ;;  %v462_v29 = vpop.f32.mrb[4].mxu1 }
  0xfe   :  { %v190_v30 = vpop.f32.mrb[5].mxu0  ;;  %v222_v31 = vpop.f32.mrb[5].mxu1 }
  0xff   :  { %v455_v32 = vpop.f32.mrb[6].mxu0  ;;  %v463_v33 = vpop.f32.mrb[6].mxu1 }
 0x100   :  { %v387_v34 = vpack.c.bf16 %v455_v32, %v454_v28  ;;  %v407_v35 = vpack.c.bf16 %v463_v33, %v462_v29  ;;  %v193_v36 = vpop.f32.mrb[7].mxu0  ;;  %v225_v37 = vpop.f32.mrb[7].mxu1 }
 0x101   :  { %v382_v38 = vpack.c.bf16 %v193_v36, %v190_v30  ;;  %v402_v39 = vpack.c.bf16 %v225_v37, %v222_v31 }
 0x102   :  { %411 = vst [vmem:[%s585_s2 + $0x18] sm:$0xff] %v387_v34   ;;  %415 = vst [vmem:[%s585_s2 + $0x38] sm:$0xff] %v407_v35  }
 0x103   :  { %410 = vst [vmem:[%s585_s2 + $0x10] sm:$0xff] %v382_v38   ;;  %414 = vst [vmem:[%s585_s2 + $0x30] sm:$0xff] %v402_v39  }

// kernel: gat_forward.6
= control target key start
LH: loop header
LB: loop body
LE: loop exit
PB: predicated region body
PF: predicated region fallthrough
CT: control target
= control target key end

     0   :  { %s567_s1 = inlined_call_operand.vmem [shape: bf16[128,128], index: 1, kind: input, shape index: {}]   ;;  %s568_s0 = inlined_call_operand.vmem [shape: f32[128,128], index: 0, kind: input, shape index: {}]   ;;  %s569_s2 = inlined_call_operand.vmem [shape: bf16[128,128], index: 2, kind: output, shape index: {}]  }
   0x1   :  { %v448_v0 = vld [vmem:[%s567_s1] sm:$0xff]   ;;  %v449_v1 = vld [vmem:[%s567_s1 + $0x8] sm:$0xff]   ;;  %v450_v2 = vld [vmem:[%s567_s1 + $0x10] sm:$0xff]  }
   0x2   :  { %400 = vmatprep.subr.bf16.mxu0 %v448_v0  ;;  %432 = vmatprep.subr.bf16.mxu1 %v448_v0  ;;  %v451_v3 = vld [vmem:[%s567_s1 + $0x18] sm:$0xff]   ;;  %v12_v4 = vld [vmem:[%s568_s0] sm:$0xff]  ;;  %v13_v5 = vld [vmem:[%s568_s0 + $0x8] sm:$0xff] }
   0x3   :  { %401 = vmatpush3.bf16.msra.mxu0 %v448_v0  ;;  %440 = vmatpush3.bf16.msra.mxu1 %v448_v0  ;;  %v20_v6 = vld [vmem:[%s568_s0 + $0x40] sm:$0xff]  ;;  %v28_v7 = vmax.f32 %v12_v4, 0.0  ;;  %v29_v8 = vmax.f32 %v13_v5, 0.0  ;;  %v21_v9 = vld [vmem:[%s568_s0 + $0x48] sm:$0xff]  ;;  %v454_v16 = vld [vmem:[%s567_s1 + $0x30] sm:$0xff]  }
   0x4   :  { %402 = vmatprep.subr.bf16.mxu0 %v449_v1  ;;  %433 = vmatprep.subr.bf16.mxu1 %v449_v1  ;;  %v36_v10 = vmax.f32 %v20_v6, 0.0  ;;  %v37_v11 = vmax.f32 %v21_v9, 0.0  ;;  %v452_v13 = vld [vmem:[%s567_s1 + $0x20] sm:$0xff]   ;;  %v453_v15 = vld [vmem:[%s567_s1 + $0x28] sm:$0xff]   ;;  %v455_v17 = vld [vmem:[%s567_s1 + $0x38] sm:$0xff]  }
   0x5   :  { %v44_v12 = vpack.c.bf16 %v29_v8, %v28_v7  ;;  %v14_v18 = vld [vmem:[%s568_s0 + $0x10] sm:$0xff]  ;;  %v15_v19 = vld [vmem:[%s568_s0 + $0x18] sm:$0xff]  ;;  %v16_v22 = vld [vmem:[%s568_s0 + $0x20] sm:$0xff] }
   0x6   :  { %v48_v14 = vpack.c.bf16 %v37_v11, %v36_v10  ;;  %v22_v20 = vld [vmem:[%s568_s0 + $0x50] sm:$0xff]  ;;  %v23_v21 = vld [vmem:[%s568_s0 + $0x58] sm:$0xff]  ;;  %v17_v23 = vld [vmem:[%s568_s0 + $0x28] sm:$0xff]  ;;  %v30_v26 = vmax.f32 %v14_v18, 0.0  ;;  %v31_v27 = vmax.f32 %v15_v19, 0.0  ;;  %v32_v30 = vmax.f32 %v16_v22, 0.0 }
   0x7   :  { %403 = vmatpush3.bf16.msra.mxu0 %v449_v1  ;;  %441 = vmatpush3.bf16.msra.mxu1 %v449_v1  ;;  %v24_v24 = vld [vmem:[%s568_s0 + $0x60] sm:$0xff]  ;;  %v25_v25 = vld [vmem:[%s568_s0 + $0x68] sm:$0xff]  ;;  %v38_v28 = vmax.f32 %v22_v20, 0.0  ;;  %v39_v29 = vmax.f32 %v23_v21, 0.0  ;;  %v33_v31 = vmax.f32 %v17_v23, 0.0  ;;  %v18_v36 = vld [vmem:[%s568_s0 + $0x30] sm:$0xff] }
   0x8   :  { %404 = vmatprep.subr.bf16.mxu0 %v450_v2  ;;  %434 = vmatprep.subr.bf16.mxu1 %v450_v2  ;;  %v40_v32 = vmax.f32 %v24_v24, 0.0  ;;  %v41_v33 = vmax.f32 %v25_v25, 0.0  ;;  %v45_v34 = vpack.c.bf16 %v31_v27, %v30_v26  ;;  %v19_v39 = vld [vmem:[%s568_s0 + $0x38] sm:$0xff]  ;;  %v26_v40 = vld [vmem:[%s568_s0 + $0x70] sm:$0xff]  ;;  %v34_v42 = vmax.f32 %v18_v36, 0.0 }
   0x9   :  { %416 = vmatprep.mubr.bf16.mxu0 %v44_v12  ;;  %424 = vmatprep.mubr.bf16.mxu1 %v48_v14  ;;  %v49_v35 = vpack.c.bf16 %v39_v29, %v38_v28  ;;  %v46_v37 = vpack.c.bf16 %v33_v31, %v32_v30  ;;  %v27_v41 = vld [vmem:[%s568_s0 + $0x78] sm:$0xff]  ;;  %v35_v43 = vmax.f32 %v19_v39, 0.0  ;;  %v42_v44 = vmax.f32 %v26_v40, 0.0 }
   0xa   :  { %v50_v38 = vpack.c.bf16 %v41_v33, %v40_v32  ;;  %v43_v45 = vmax.f32 %v27_v41, 0.0 }
   0xb   :  { %405 = vmatpush3.bf16.msra.mxu0 %v450_v2  ;;  %442 = vmatpush3.bf16.msra.mxu1 %v450_v2  ;;  %v47_v46 = vpack.c.bf16 %v35_v43, %v34_v42 }
   0xc   :  { %406 = vmatprep.subr.bf16.mxu0 %v451_v3  ;;  %435 = vmatprep.subr.bf16.mxu1 %v451_v3  ;;  %v51_v47 = vpack.c.bf16 %v43_v45, %v42_v44 }
   0xf   :  { %407 = vmatpush3.bf16.msra.mxu0 %v451_v3  ;;  %443 = vmatpush3.bf16.msra.mxu1 %v451_v3 }
  0x10   :  { %408 = vmatprep.subr.bf16.mxu0 %v452_v13  ;;  %436 = vmatprep.subr.bf16.mxu1 %v452_v13 }
  0x13   :  { %409 = vmatpush3.bf16.msra.mxu0 %v452_v13  ;;  %444 = vmatpush3.bf16.msra.mxu1 %v452_v13 }
  0x14   :  { %410 = vmatprep.subr.bf16.mxu0 %v453_v15  ;;  %437 = vmatprep.subr.bf16.mxu1 %v453_v15 }
  0x17   :  { %411 = vmatpush3.bf16.msra.mxu0 %v453_v15  ;;  %445 = vmatpush3.bf16.msra.mxu1 %v453_v15 }
  0x18   :  { %412 = vmatprep.subr.bf16.mxu0 %v454_v16  ;;  %438 = vmatprep.subr.bf16.mxu1 %v454_v16 }
  0x1b   :  { %413 = vmatpush3.bf16.msra.mxu0 %v454_v16  ;;  %446 = vmatpush3.bf16.msra.mxu1 %v454_v16 }
  0x1c   :  { %414 = vmatprep.subr.bf16.mxu0 %v455_v17  ;;  %439 = vmatprep.subr.bf16.mxu1 %v455_v17 }
  0x1f   :  { %415 = vmatpush3.bf16.msra.mxu0 %v455_v17  ;;  %447 = vmatpush3.bf16.msra.mxu1 %v455_v17 }
  0x22   :  { %417 = vmatmul.mubr.bf16.vlgmr.msra.gmra.mrb[0].mxu0 %v45_v34  ;;  %425 = vmatmul.mubr.bf16.vlgmr.msra.gmra.mrb[0].mxu1 %v49_v35 }
  0x23   :  { %420 = vmatprep.mubr.bf16.mxu0 %v46_v37  ;;  %428 = vmatprep.mubr.bf16.mxu1 %v50_v38 }
  0x2a   :  { %421 = vmatmul.mubr.bf16.gmra.mrb[4].mxu0 %v47_v46  ;;  %429 = vmatmul.mubr.bf16.gmra.mrb[4].mxu1 %v51_v47 }
  0xf5   :  { %v418_v48 = vpop.f32.mrb[0].mxu0  ;;  %v426_v49 = vpop.f32.mrb[0].mxu1 }
  0xf6   :  { %v150_v50 = vpop.f32.mrb[1].mxu0  ;;  %v182_v51 = vpop.f32.mrb[1].mxu1 }
  0xf7   :  { %v419_v52 = vpop.f32.mrb[2].mxu0  ;;  %v427_v53 = vpop.f32.mrb[2].mxu1 }
  0xf8   :  { %v345_v54 = vpack.c.bf16 %v419_v52, %v418_v48  ;;  %v365_v55 = vpack.c.bf16 %v427_v53, %v426_v49  ;;  %v153_v56 = vpop.f32.mrb[3].mxu0  ;;  %v185_v57 = vpop.f32.mrb[3].mxu1 }
  0xf9   :  { %v340_v58 = vpack.c.bf16 %v153_v56, %v150_v50  ;;  %v360_v59 = vpack.c.bf16 %v185_v57, %v182_v51 }
  0xfa   :  { %377 = vst [vmem:[%s569_s2 + $0x8] sm:$0xff] %v345_v54   ;;  %381 = vst [vmem:[%s569_s2 + $0x28] sm:$0xff] %v365_v55  }
  0xfb   :  { %341 = vst [vmem:[%s569_s2] sm:$0xff] %v340_v58   ;;  %380 = vst [vmem:[%s569_s2 + $0x20] sm:$0xff] %v360_v59  }
  0xfd   :  { %v422_v60 = vpop.f32.mrb[4].mxu0  ;;  %v430_v61 = vpop.f32.mrb[4].mxu1 }
  0xfe   :  { %v166_v62 = vpop.f32.mrb[5].mxu0  ;;  %v198_v63 = vpop.f32.mrb[5].mxu1 }
  0xff   :  { %v423_v0 = vpop.f32.mrb[6].mxu0  ;;  %v431_v1 = vpop.f32.mrb[6].mxu1 }
 0x100   :  { %v355_v2 = vpack.c.bf16 %v423_v0, %v422_v60  ;;  %v375_v3 = vpack.c.bf16 %v431_v1, %v430_v61  ;;  %v169_v4 = vpop.f32.mrb[7].mxu0  ;;  %v201_v5 = vpop.f32.mrb[7].mxu1 }
 0x101   :  { %v350_v6 = vpack.c.bf16 %v169_v4, %v166_v62  ;;  %v370_v7 = vpack.c.bf16 %v201_v5, %v198_v63 }
 0x102   :  { %379 = vst [vmem:[%s569_s2 + $0x18] sm:$0xff] %v355_v2   ;;  %383 = vst [vmem:[%s569_s2 + $0x38] sm:$0xff] %v375_v3  }
 0x103   :  { %378 = vst [vmem:[%s569_s2 + $0x10] sm:$0xff] %v350_v6   ;;  %382 = vst [vmem:[%s569_s2 + $0x30] sm:$0xff] %v370_v7  }

// kernel: gat_forward.5
= control target key start
LH: loop header
LB: loop body
LE: loop exit
PB: predicated region body
PF: predicated region fallthrough
CT: control target
= control target key end

     0   :  { %v1045_v3 = vmov 126   ;;  %s1046_s27 = smov 1   ;;  %s1375_s1 = inlined_call_operand.vmem [shape: bf16[128,128], index: 1, kind: input, shape index: {}, may-alias: {0,1}]   ;;  %s1376_s0 = inlined_call_operand.vmem [shape: bf16[128,128], index: 0, kind: input, shape index: {}, may-alias: {0,1}]   ;;  %s1377_s2 = inlined_call_operand.vmem [shape: bf16[128,128], index: 2, kind: input, shape index: {}]   ;;  %s1378_s3 = inlined_call_operand.vmem [shape: f32[1,128], index: 3, kind: input, shape index: {}]   ;;  %s1379_s4 = inlined_call_operand.vmem [shape: f32[128,128], index: 4, kind: output, shape index: {}]  }
   0x1   :  { %v50_v0 = vld [vmem:[%s1375_s1] sm:$0xff]   ;;  %v1078_v1 = vld [vmem:[%s1375_s1 + $0x8] sm:$0xff]   ;;  %v1083_v2 = vld [vmem:[%s1375_s1 + $0x10] sm:$0xff]   ;;  %913 = vset.pattern.permute.xlu1 %v1045_v3  ;;  %907 = vset.pattern.permute.xlu0 %v1045_v3 }
   0x2   :  { %v66_v4 = vunpack.c.l.bf16 %v50_v0  ;;  %v67_v5 = vunpack.c.h.bf16 %v50_v0  ;;  %v68_v6 = vunpack.c.l.bf16 %v1078_v1  ;;  %v1089_v7 = vld [vmem:[%s1375_s1 + $0x18] sm:$0xff]   ;;  %v69_v8 = vunpack.c.h.bf16 %v1078_v1  ;;  %v1097_v11 = vld [vmem:[%s1375_s1 + $0x20] sm:$0xff]   ;;  %v1104_v15 = vld [vmem:[%s1375_s1 + $0x28] sm:$0xff]   ;;  %817 = vmatprep.subr.bf16.mxu0 %v50_v0  ;;  %849 = vmatprep.subr.bf16.mxu1 %v50_v0 }
   0x3   :  { %v70_v9 = vunpack.c.l.bf16 %v1083_v2  ;;  %v71_v10 = vunpack.c.h.bf16 %v1083_v2  ;;  %v72_v13 = vunpack.c.l.bf16 %v1089_v7  ;;  %v73_v14 = vunpack.c.h.bf16 %v1089_v7  ;;  %818 = vmatpush3.bf16.msra.mxu0 %v50_v0  ;;  %857 = vmatpush3.bf16.msra.mxu1 %v50_v0  ;;  %v1115_v23 = vld [vmem:[%s1375_s1 + $0x30] sm:$0xff]   ;;  %v1120_v24 = vld [vmem:[%s1375_s1 + $0x38] sm:$0xff]   ;;  %v724_v31 = vld [vmem:[%s1376_s0] sm:$0xff]  }
   0x4   :  { %v867_v12 = vpack.i.bf16 %v67_v5, %v66_v4  ;;  %v872_v17 = vpack.i.bf16 %v69_v8, %v68_v6  ;;  %v74_v18 = vunpack.c.l.bf16 %v1097_v11  ;;  %v75_v19 = vunpack.c.h.bf16 %v1097_v11  ;;  %v790_v32 = vld [vmem:[%s1376_s0 + $0x20] sm:$0xff]   ;;  %v791_v39 = vld [vmem:[%s1376_s0 + $0x28] sm:$0xff]   ;;  %v792_v47 = vld [vmem:[%s1376_s0 + $0x30] sm:$0xff]   ;;  %819 = vmatprep.subr.bf16.mxu0 %v1078_v1  ;;  %850 = vmatprep.subr.bf16.mxu1 %v1078_v1 }
   0x5   :  { %v877_v16 = vpack.i.bf16 %v71_v10, %v70_v9  ;;  %v882_v20 = vpack.i.bf16 %v73_v14, %v72_v13  ;;  %v76_v21 = vunpack.c.l.bf16 %v1104_v15  ;;  %v77_v22 = vunpack.c.h.bf16 %v1104_v15  ;;  %v787_v40 = vld [vmem:[%s1376_s0 + $0x8] sm:$0xff]   ;;  %v788_v48 = vld [vmem:[%s1376_s0 + $0x10] sm:$0xff]   ;;  %v793_v55 = vld [vmem:[%s1376_s0 + $0x38] sm:$0xff]  }
   0x6   :  { %868 = vrot.lane.b32.xlu0 %v867_v12, %s1046_s27  ;;  %v887_v25 = vpack.i.bf16 %v75_v19, %v74_v18  ;;  %v78_v26 = vunpack.c.l.bf16 %v1115_v23  ;;  %v79_v27 = vunpack.c.h.bf16 %v1115_v23  ;;  %v80_v29 = vunpack.c.l.bf16 %v1120_v24  ;;  %v789_v56 = vld [vmem:[%s1376_s0 + $0x18] sm:$0xff]  }
   0x7   :  { %878 = vrot.lane.b32.xlu1 %v877_v16, %s1046_s27  ;;  %v892_v28 = vpack.i.bf16 %v77_v22, %v76_v21  ;;  %v81_v30 = vunpack.c.h.bf16 %v1120_v24  ;;  %v725_v34 = vunpack.c.l.bf16 %v724_v31  ;;  %v726_v35 = vunpack.c.h.bf16 %v724_v31  ;;  %820 = vmatpush3.bf16.msra.mxu0 %v1078_v1 }
   0x8   :  { %v897_v33 = vpack.i.bf16 %v79_v27, %v78_v26  ;;  %v741_v37 = vunpack.c.l.bf16 %v790_v32  ;;  %v742_v38 = vunpack.c.h.bf16 %v790_v32  ;;  %v745_v42 = vunpack.c.l.bf16 %v791_v39  ;;  %821 = vmatprep.subr.bf16.mxu0 %v1083_v2  ;;  %858 = vmatpush3.bf16.msra.mxu1 %v1078_v1 }
   0x9   :  { %v902_v36 = vpack.i.bf16 %v81_v30, %v80_v29  ;;  %v908_v41 = vpack.i.bf16 %v726_v35, %v725_v34  ;;  %v746_v43 = vunpack.c.h.bf16 %v791_v39  ;;  %v729_v45 = vunpack.c.l.bf16 %v787_v40  ;;  %851 = vmatprep.subr.bf16.mxu1 %v1083_v2 }
   0xa   :  { %873 = vrot.lane.b32.xlu0 %v872_v17, %s1046_s27  ;;  %v914_v44 = vpack.i.bf16 %v742_v38, %v741_v37  ;;  %v730_v46 = vunpack.c.h.bf16 %v787_v40  ;;  %v749_v50 = vunpack.c.l.bf16 %v792_v47  ;;  %v750_v51 = vunpack.c.h.bf16 %v792_v47 }
   0xb   :  { %883 = vrot.lane.b32.xlu1 %v882_v20, %s1046_s27  ;;  %v924_v49 = vpack.i.bf16 %v746_v43, %v745_v42  ;;  %v733_v53 = vunpack.c.l.bf16 %v788_v48  ;;  %v734_v54 = vunpack.c.h.bf16 %v788_v48  ;;  %v753_v58 = vunpack.c.l.bf16 %v793_v55  ;;  %v756_v42 = vld [vmem:[%s1377_s2] sm:$0xff]   ;;  %822 = vmatpush3.bf16.msra.mxu0 %v1083_v2 }
   0xc   :  { %v919_v52 = vpack.i.bf16 %v730_v46, %v729_v45  ;;  %v934_v57 = vpack.i.bf16 %v750_v51, %v749_v50  ;;  %v754_v59 = vunpack.c.h.bf16 %v793_v55  ;;  %v737_v61 = vunpack.c.l.bf16 %v789_v56  ;;  %859 = vmatpush3.bf16.msra.mxu1 %v1083_v2  ;;  %823 = vmatprep.subr.bf16.mxu0 %v1089_v7 }
   0xd   :  { %v929_v60 = vpack.i.bf16 %v734_v54, %v733_v53  ;;  %v738_v62 = vunpack.c.h.bf16 %v789_v56  ;;  %v258_v34 = vlaneseq  ;;  %v757_v45 = vunpack.c.l.bf16 %v756_v42  ;;  %v797_v54 = vld [vmem:[%s1377_s2 + $0x20] sm:$0xff]   ;;  %852 = vmatprep.subr.bf16.mxu1 %v1089_v7 }
   0xe   :  { %888 = vrot.lane.b32.xlu0 %v887_v25, %s1046_s27  ;;  %v944_v63 = vpack.i.bf16 %v754_v59, %v753_v58  ;;  %v758_v51 = vunpack.c.h.bf16 %v756_v42 }
   0xf   :  { %893 = vrot.lane.b32.xlu1 %v892_v28, %s1046_s27  ;;  %v939_v0 = vpack.i.bf16 %v738_v62, %v737_v61  ;;  %824 = vmatpush3.bf16.msra.mxu0 %v1089_v7 }
  0x10   :  { %860 = vmatpush3.bf16.msra.mxu1 %v1089_v7  ;;  %825 = vmatprep.subr.bf16.mxu0 %v1097_v11 }
  0x11   :  { %853 = vmatprep.subr.bf16.mxu1 %v1097_v11 }
  0x12   :  { %898 = vrot.lane.b32.xlu0 %v897_v33, %s1046_s27 }
  0x13   :  { %903 = vrot.lane.b32.xlu1 %v902_v36, %s1046_s27  ;;  %v259_v36 = vshrl.u32 %v258_v34, 7  ;;  %826 = vmatpush3.bf16.msra.mxu0 %v1097_v11 }
  0x14   :  { %861 = vmatpush3.bf16.msra.mxu1 %v1097_v11  ;;  %827 = vmatprep.subr.bf16.mxu0 %v1104_v15 }
  0x15   :  { %v260_v38 = vsub.s32 0, %v259_v36  ;;  %854 = vmatprep.subr.bf16.mxu1 %v1104_v15 }
  0x16   :  { %909 = vperm.xlu0 %907, %v908_v41  }
  0x17   :  { %915 = vperm.xlu1 %913, %v914_v44   ;;  %828 = vmatpush3.bf16.msra.mxu0 %v1104_v15 }
  0x18   :  { %862 = vmatpush3.bf16.msra.mxu1 %v1104_v15  ;;  %829 = vmatprep.subr.bf16.mxu0 %v1115_v23 }
  0x19   :  { %855 = vmatprep.subr.bf16.mxu1 %v1115_v23 }
  0x1a   :  { %925 = vperm.xlu0 %907, %v924_v49  }
  0x1b   :  { %920 = vperm.xlu1 %913, %v919_v52   ;;  %830 = vmatpush3.bf16.msra.mxu0 %v1115_v23 }
  0x1c   :  { %863 = vmatpush3.bf16.msra.mxu1 %v1115_v23  ;;  %831 = vmatprep.subr.bf16.mxu0 %v1120_v24 }
  0x1d   :  { %856 = vmatprep.subr.bf16.mxu1 %v1120_v24 }
  0x1e   :  { %935 = vperm.xlu0 %907, %v934_v57   ;;  %v773_v57 = vunpack.c.l.bf16 %v797_v54 }
  0x1f   :  { %930 = vperm.xlu1 %913, %v929_v60   ;;  %832 = vmatpush3.bf16.msra.mxu0 %v1120_v24 }
  0x20   :  { %864 = vmatpush3.bf16.msra.mxu1 %v1120_v24 }
  0x22   :  { %945 = vperm.xlu0 %907, %v944_v63   ;;  %v774_v63 = vunpack.c.h.bf16 %v797_v54 }
  0x23   :  { %940 = vperm.xlu1 %913, %v939_v0  }
  0x78   :  { %v869_v3 = vpop.permute.xlu0 %868 }
  0x79   :  { %v870_v4 = vunpack.i.l.bf16 %v869_v3  ;;  %v871_v6 = vunpack.i.h.bf16 %v869_v3  ;;  %v879_v9 = vpop.permute.xlu1 %878 }
  0x7a   :  { %v880_v12 = vunpack.i.l.bf16 %v879_v9  ;;  %v881_v14 = vunpack.i.h.bf16 %v879_v9 }
  0x7b   :  { %146 = vxpose.xlu1.b32.start [1/16] (narrow) %v870_v4, 8  ;;  %v794_v4 = vld [vmem:[%s1377_s2 + $0x8] sm:$0xff]  }
  0x7c   :  { %v874_v5 = vpop.permute.xlu0 %873 }
  0x7d   :  { %v875_v8 = vunpack.i.l.bf16 %v874_v5  ;;  %v876_v10 = vunpack.i.h.bf16 %v874_v5  ;;  %v884_v13 = vpop.permute.xlu1 %883 }
  0x7e   :  { %v885_v16 = vunpack.i.l.bf16 %v884_v13  ;;  %v886_v18 = vunpack.i.h.bf16 %v884_v13 }
  0x7f   :  { %147 = vxpose.xlu1.b32.cont [2/16] (narrow) %v871_v6, 8 }
  0x80   :  { %v889_v17 = vpop.permute.xlu0 %888 }
  0x81   :  { %v890_v19 = vunpack.i.l.bf16 %v889_v17  ;;  %v894_v20 = vpop.permute.xlu1 %893  ;;  %v891_v21 = vunpack.i.h.bf16 %v889_v17 }
  0x82   :  { %v895_v22 = vunpack.i.l.bf16 %v894_v20  ;;  %v896_v26 = vunpack.i.h.bf16 %v894_v20 }
  0x83   :  { %148 = vxpose.xlu1.b32.cont [3/16] (narrow) %v875_v8, 8  ;;  %v761_v8 = vunpack.c.l.bf16 %v794_v4 }
  0x84   :  { %v899_v25 = vpop.permute.xlu0 %898 }
  0x85   :  { %v900_v27 = vunpack.i.l.bf16 %v899_v25  ;;  %v904_v28 = vpop.permute.xlu1 %903  ;;  %v901_v29 = vunpack.i.h.bf16 %v899_v25 }
  0x86   :  { %v905_v30 = vunpack.i.l.bf16 %v904_v28  ;;  %v906_v31 = vunpack.i.h.bf16 %v904_v28 }
  0x87   :  { %149 = vxpose.xlu1.b32.cont [4/16] (narrow) %v876_v10, 8 }
  0x8b   :  { %150 = vxpose.xlu1.b32.cont [5/16] (narrow) %v880_v12, 8 }
  0x8f   :  { %151 = vxpose.xlu1.b32.cont [6/16] (narrow) %v881_v14, 8  ;;  %v762_v14 = vunpack.c.h.bf16 %v794_v4 }
  0x93   :  { %152 = vxpose.xlu1.b32.cont [7/16] (narrow) %v885_v16, 8 }
  0x95   :  { %v910_v39 = vpop.permute.xlu0 %909 }
  0x96   :  { %v916_v32 = vpop.permute.xlu1 %915 }
  0x97   :  { %153 = vxpose.xlu1.b32.cont [8/16] (narrow) %v886_v18, 8  ;;  %v798_v18 = vld [vmem:[%s1377_s2 + $0x28] sm:$0xff]  }
  0x99   :  { %v926_v61 = vpop.permute.xlu0 %925 }
  0x9a   :  { %v921_v33 = vpop.permute.xlu1 %920 }
  0x9b   :  { %154 = vxpose.xlu1.b32.cont [9/16] (narrow) %v890_v19, 8 }
  0x9e   :  { %v1156_v35 = vpop.permute.xlu1 %930 }
  0x9f   :  { %155 = vxpose.xlu1.b32.cont [10/16] (narrow) %v891_v21, 8  ;;  %v777_v21 = vunpack.c.l.bf16 %v798_v18 }
  0xa2   :  { %v1158_v37 = vpop.permute.xlu1 %940 }
  0xa3   :  { %156 = vxpose.xlu1.b32.cont [11/16] (narrow) %v895_v22, 8 }
  0xa7   :  { %157 = vxpose.xlu1.b32.cont [12/16] (narrow) %v896_v26, 8 }
  0xab   :  { %158 = vxpose.xlu1.b32.cont [13/16] (narrow) %v900_v27, 8  ;;  %v936_v27 = vpop.permute.xlu0 %935 }
  0xaf   :  { %159 = vxpose.xlu1.b32.cont [14/16] (narrow) %v901_v29, 8  ;;  %v778_v29 = vunpack.c.h.bf16 %v798_v18 }
  0xb3   :  { %160 = vxpose.xlu1.b32.cont [15/16] (narrow) %v905_v30, 8 }
  0xb7   :  { %161 = vxpose.xlu1.b32.end [16/16] (narrow) %v906_v31, 8 }
  0xfb   :  { %v162_v40 = vpop.trf.xlu1 }
  0xfc   :  { %v1160_v41 = vrot.slane %v162_v40, %v260_v38 }
  0xfe   :  { %v1029_v43 = vadd.low.f32.bf16 %v1160_v41, %v910_v39  ;;  %v1030_v44 = vadd.high.f32.bf16 %v1160_v41, %v910_v39  ;;  %v1031_v48 = vadd.low.f32.bf16 %v1160_v41, %v916_v32  ;;  %v1032_v55 = vadd.high.f32.bf16 %v1160_v41, %v916_v32  ;;  %v795_v32 = vld [vmem:[%s1377_s2 + $0x10] sm:$0xff]  }
  0xff   :  { %v1033_v60 = vadd.low.f32.bf16 %v1160_v41, %v921_v33  ;;  %v1034_v5 = vadd.high.f32.bf16 %v1160_v41, %v921_v33  ;;  %v1035_v12 = vadd.low.f32.bf16 %v1160_v41, %v926_v61  ;;  %v1036_v19 = vadd.high.f32.bf16 %v1160_v41, %v926_v61 }
 0x100   :  { %vm278_vm0 = vcmp.ge.f32.partialorder %v1029_v43, 0.0  ;;  %v294_v46 = vmul.f32 0.2, %v1029_v43  ;;  %v295_v47 = vmul.f32 0.2, %v1030_v44  ;;  %vm279_vm1 = vcmp.ge.f32.partialorder %v1030_v44, 0.0 }
 0x101   :  { %v302_v53 = vmul.f32 0.2, %v1031_v48  ;;  %vm286_vm2 = vcmp.ge.f32.partialorder %v1031_v48, 0.0  ;;  %v303_v59 = vmul.f32 0.2, %v1032_v55  ;;  %vm287_vm3 = vcmp.ge.f32.partialorder %v1032_v55, 0.0 }
 0x102   :  { %v310_v49 = vsel %vm278_vm0, %v1029_v43, %v294_v46  ;;  %v311_v52 = vsel %vm279_vm1, %v1030_v44, %v295_v47  ;;  %v296_v3 = vmul.f32 0.2, %v1033_v60  ;;  %vm280_vm4 = vcmp.ge.f32.partialorder %v1033_v60, 0.0 }
 0x103   :  { %v1168_v50 = vadd.f32 %v757_v45, %v310_v49  ;;  %v1175_v56 = vadd.f32 %v758_v51, %v311_v52  ;;  %v318_v58 = vsel %vm286_vm2, %v1031_v48, %v302_v53  ;;  %v319_v0 = vsel %vm287_vm3, %v1032_v55, %v303_v59  ;;  %v799_v45 = vld [vmem:[%s1377_s2 + $0x30] sm:$0xff]   ;;  %v946_v52 = vpop.permute.xlu0 %945 }
 0x104   :  { %v1179_v62 = vadd.f32 %v773_v57, %v318_v58  ;;  %v1186_v6 = vadd.f32 %v774_v63, %v319_v0  ;;  %v312_v9 = vsel %vm280_vm4, %v1033_v60, %v296_v3  ;;  %v297_v10 = vmul.f32 0.2, %v1034_v5  ;;  %v796_v57 = vld [vmem:[%s1377_s2 + $0x18] sm:$0xff]  }
 0x105   :  { %374 = vmax.xlane.f32.xlu0 %v1168_v50  ;;  %vm281_vm5 = vcmp.ge.f32.partialorder %v1034_v5, 0.0  ;;  %v1190_v13 = vadd.f32 %v761_v8, %v312_v9  ;;  %v304_v17 = vmul.f32 0.2, %v1035_v12  ;;  %vm288_vm6 = vcmp.ge.f32.partialorder %v1035_v12, 0.0 }
 0x106   :  { %v313_v16 = vsel %vm281_vm5, %v1034_v5, %v297_v10  ;;  %v305_v25 = vmul.f32 0.2, %v1036_v19  ;;  %v1037_v26 = vadd.low.f32.bf16 %v1160_v41, %v1156_v35  ;;  %vm289_vm7 = vcmp.ge.f32.partialorder %v1036_v19, 0.0  ;;  %v800_v5 = vld [vmem:[%s1377_s2 + $0x38] sm:$0xff]  }
 0x107   :  { %v1197_v20 = vadd.f32 %v762_v14, %v313_v16  ;;  %v320_v22 = vsel %vm288_vm6, %v1035_v12, %v304_v17  ;;  %v1038_v33 = vadd.high.f32.bf16 %v1160_v41, %v1156_v35  ;;  %v765_v36 = vunpack.c.l.bf16 %v795_v32 }
 0x108   :  { %v1202_v28 = vadd.f32 %v777_v21, %v320_v22  ;;  %v321_v30 = vsel %vm289_vm7, %v1036_v19, %v305_v25  ;;  %v298_v31 = vmul.f32 0.2, %v1037_v26  ;;  %vm282_vm8 = vcmp.ge.f32.partialorder %v1037_v26, 0.0 }
 0x109   :  { %376 = vmax.xlane.f32.xlu0 %v1175_v56  ;;  %v1210_v34 = vadd.f32 %v778_v29, %v321_v30  ;;  %v299_v39 = vmul.f32 0.2, %v1038_v33  ;;  %v1039_v40 = vadd.low.f32.bf16 %v1160_v41, %v936_v27  ;;  %vm283_vm9 = vcmp.ge.f32.partialorder %v1038_v33, 0.0 }
 0x10a   :  { %v314_v38 = vsel %vm282_vm8, %v1037_v26, %v298_v31  ;;  %v766_v42 = vunpack.c.h.bf16 %v795_v32  ;;  %v1040_v46 = vadd.high.f32.bf16 %v1160_v41, %v936_v27  ;;  %v781_v48 = vunpack.c.l.bf16 %v799_v45 }
 0x10b   :  { %v1217_v35 = vadd.f32 %v765_v36, %v314_v38  ;;  %v315_v43 = vsel %vm283_vm9, %v1038_v33, %v299_v39  ;;  %v306_v44 = vmul.f32 0.2, %v1039_v40  ;;  %vm290_vm10 = vcmp.ge.f32.partialorder %v1039_v40, 0.0 }
 0x10c   :  { %v1228_v47 = vadd.f32 %v766_v42, %v315_v43  ;;  %v307_v49 = vmul.f32 0.2, %v1040_v46  ;;  %v1041_v51 = vadd.low.f32.bf16 %v1160_v41, %v1158_v37  ;;  %vm291_vm11 = vcmp.ge.f32.partialorder %v1040_v46, 0.0 }
 0x10d   :  { %390 = vmax.xlane.f32.xlu0 %v1179_v62  ;;  %v322_v1 = vsel %vm290_vm10, %v1039_v40, %v306_v44  ;;  %v782_v54 = vunpack.c.h.bf16 %v799_v45  ;;  %v1042_v58 = vadd.high.f32.bf16 %v1160_v41, %v1158_v37  ;;  %v769_v7 = vunpack.c.l.bf16 %v796_v57 }
 0x10e   :  { %v1237_v53 = vadd.f32 %v781_v48, %v322_v1  ;;  %v323_v2 = vsel %vm291_vm11, %v1040_v46, %v307_v49  ;;  %v300_v55 = vmul.f32 0.2, %v1041_v51  ;;  %vm284_vm12 = vcmp.ge.f32.partialorder %v1041_v51, 0.0 }
 0x10f   :  { %v1249_v59 = vadd.f32 %v782_v54, %v323_v2  ;;  %v1043_v60 = vadd.low.f32.bf16 %v1160_v41, %v946_v52  ;;  %v301_v63 = vmul.f32 0.2, %v1042_v58  ;;  %vm285_vm13 = vcmp.ge.f32.partialorder %v1042_v58, 0.0 }
 0x110   :  { %v316_v61 = vsel %vm284_vm12, %v1041_v51, %v300_v55  ;;  %v770_v0 = vunpack.c.h.bf16 %v796_v57  ;;  %v1044_v11 = vadd.high.f32.bf16 %v1160_v41, %v946_v52  ;;  %v785_v15 = vunpack.c.l.bf16 %v800_v5 }
 0x111   :  { %392 = vmax.xlane.f32.xlu0 %v1186_v6  ;;  %v1257_v37 = vadd.f32 %v769_v7, %v316_v61  ;;  %v317_v3 = vsel %vm285_vm13, %v1042_v58, %v301_v63  ;;  %v308_v4 = vmul.f32 0.2, %v1043_v60  ;;  %vm292_vm14 = vcmp.ge.f32.partialorder %v1043_v60, 0.0 }
 0x112   :  { %v1268_v8 = vadd.f32 %v770_v0, %v317_v3  ;;  %v309_v9 = vmul.f32 0.2, %v1044_v11  ;;  %vm293_vm15 = vcmp.ge.f32.partialorder %v1044_v11, 0.0  ;;  %v786_v12 = vunpack.c.h.bf16 %v800_v5 }
 0x113   :  { %v324_v41 = vsel %vm292_vm14, %v1043_v60, %v308_v4 }
 0x114   :  { %v1275_v10 = vadd.f32 %v785_v15, %v324_v41  ;;  %v325_v14 = vsel %vm293_vm15, %v1044_v11, %v309_v9 }
 0x115   :  { %378 = vmax.xlane.f32.xlu0 %v1190_v13  ;;  %v1279_v23 = vadd.f32 %v786_v12, %v325_v14 }
 0x119   :  { %380 = vmax.xlane.f32.xlu0 %v1197_v20 }
 0x11d   :  { %394 = vmax.xlane.f32.xlu0 %v1202_v28 }
 0x121   :  { %396 = vmax.xlane.f32.xlu0 %v1210_v34 }
 0x125   :  { %382 = vmax.xlane.f32.xlu0 %v1217_v35 }
 0x129   :  { %384 = vmax.xlane.f32.xlu0 %v1228_v47 }
 0x12d   :  { %398 = vmax.xlane.f32.xlu0 %v1237_v53 }
 0x131   :  { %400 = vmax.xlane.f32.xlu0 %v1249_v59 }
 0x135   :  { %386 = vmax.xlane.f32.xlu0 %v1257_v37 }
 0x139   :  { %388 = vmax.xlane.f32.xlu0 %v1268_v8 }
 0x13d   :  { %402 = vmax.xlane.f32.xlu0 %v1275_v10 }
 0x141   :  { %404 = vmax.xlane.f32.xlu0 %v1279_v23 }
 0x192   :  { %v375_v16 = vpop.xlane.xlu0 %374 }
 0x193   :  { %v406_v17 = vsub.f32 %v1168_v50, %v375_v16 }
 0x195   :  { %v422_v18 = vmul.f32 1.442695, %v406_v17 }
 0x196   :  { %v377_v19 = vpop.xlane.xlu0 %376 }
 0x197   :  { %965 = vpow2.f32 %v422_v18  ;;  %v407_v21 = vsub.f32 %v1175_v56, %v377_v19 }
 0x199   :  { %v424_v22 = vmul.f32 1.442695, %v407_v21 }
 0x19a   :  { %v391_v25 = vpop.xlane.xlu0 %390 }
 0x19b   :  { %967 = vpow2.f32 %v424_v22  ;;  %v414_v24 = vsub.f32 %v1179_v62, %v391_v25 }
 0x19d   :  { %v438_v26 = vmul.f32 1.442695, %v414_v24 }
 0x19e   :  { %v393_v27 = vpop.xlane.xlu0 %392 }
 0x19f   :  { %v415_v29 = vsub.f32 %v1186_v6, %v393_v27  ;;  %969 = vpow2.f32 %v438_v26 }
 0x1a1   :  { %v966_v30 = vpop.eup %965  ;;  %v440_v31 = vmul.f32 1.442695, %v415_v29 }
 0x1a2   :  { %454 = vadd.xlane.f32.xlu0 %v966_v30  ;;  %v379_v32 = vpop.xlane.xlu0 %378 }
 0x1a3   :  { %971 = vpow2.f32 %v440_v31  ;;  %v408_v50 = vsub.f32 %v1190_v13, %v379_v32 }
 0x1a5   :  { %v968_v33 = vpop.eup %967  ;;  %v426_v36 = vmul.f32 1.442695, %v408_v50 }
 0x1a6   :  { %456 = vadd.xlane.f32.xlu0 %v968_v33  ;;  %v381_v56 = vpop.xlane.xlu0 %380  ;;  %v486_v38 = vpack.c.bf16 %v968_v33, %v966_v30 }
 0x1a7   :  { %973 = vpow2.f32 %v426_v36  ;;  %v409_v62 = vsub.f32 %v1197_v20, %v381_v56 }
 0x1a8   :  { %833 = vmatprep.mubr.bf16.mxu0 %v486_v38 }
 0x1a9   :  { %v428_v39 = vmul.f32 1.442695, %v409_v62  ;;  %v1289_v42 = vpop.eup %969 }
 0x1aa   :  { %v395_v40 = vpop.xlane.xlu0 %394 }
 0x1ab   :  { %975 = vpow2.f32 %v428_v39  ;;  %v416_v6 = vsub.f32 %v1202_v28, %v395_v40 }
 0x1ad   :  { %v1291_v43 = vpop.eup %971  ;;  %v442_v44 = vmul.f32 1.442695, %v416_v6  ;;  %v1309_v6 = vld [vmem:[%s1378_s3] ss:$0 sm:$0xff] }
 0x1ae   :  { %v397_v13 = vpop.xlane.xlu0 %396  ;;  %v490_v45 = vpack.c.bf16 %v1291_v43, %v1289_v42 }
 0x1af   :  { %v417_v46 = vsub.f32 %v1210_v34, %v397_v13  ;;  %977 = vpow2.f32 %v442_v44 }
 0x1b0   :  { %841 = vmatprep.mubr.bf16.mxu1 %v490_v45 }
 0x1b1   :  { %v974_v48 = vpop.eup %973  ;;  %v444_v20 = vmul.f32 1.442695, %v417_v46 }
 0x1b2   :  { %458 = vadd.xlane.f32.xlu1 %v974_v48  ;;  %v383_v1 = vpop.xlane.xlu0 %382 }
 0x1b3   :  { %979 = vpow2.f32 %v444_v20  ;;  %v410_v28 = vsub.f32 %v1217_v35, %v383_v1 }
 0x1b5   :  { %v976_v49 = vpop.eup %975  ;;  %v430_v51 = vmul.f32 1.442695, %v410_v28 }
 0x1b6   :  { %460 = vadd.xlane.f32.xlu0 %v976_v49  ;;  %v385_v52 = vpop.xlane.xlu0 %384  ;;  %v487_v54 = vpack.c.bf16 %v976_v49, %v974_v48 }
 0x1b7   :  { %981 = vpow2.f32 %v430_v51  ;;  %v411_v2 = vsub.f32 %v1228_v47, %v385_v52 }
 0x1b8   :  { %834 = vmatmul.mubr.bf16.vlgmr.msra.gmra.mrb[0].mxu0 %v487_v54 }
 0x1b9   :  { %v432_v55 = vmul.f32 1.442695, %v411_v2  ;;  %v978_v58 = vpop.eup %977 }
 0x1ba   :  { %v399_v34 = vpop.xlane.xlu0 %398 }
 0x1bb   :  { %983 = vpow2.f32 %v432_v55  ;;  %v418_v57 = vsub.f32 %v1237_v53, %v399_v34 }
 0x1bd   :  { %v980_v7 = vpop.eup %979  ;;  %v446_v60 = vmul.f32 1.442695, %v418_v57 }
 0x1be   :  { %v401_v61 = vpop.xlane.xlu0 %400  ;;  %v491_v63 = vpack.c.bf16 %v980_v7, %v978_v58 }
 0x1bf   :  { %v419_v35 = vsub.f32 %v1249_v59, %v401_v61  ;;  %985 = vpow2.f32 %v446_v60 }
 0x1c0   :  { %842 = vmatmul.mubr.bf16.vlgmr.msra.gmra.mrb[0].mxu1 %v491_v63 }
 0x1c1   :  { %v982_v0 = vpop.eup %981  ;;  %v448_v11 = vmul.f32 1.442695, %v419_v35 }
 0x1c2   :  { %462 = vadd.xlane.f32.xlu0 %v982_v0  ;;  %v387_v3 = vpop.xlane.xlu0 %386 }
 0x1c3   :  { %987 = vpow2.f32 %v448_v11  ;;  %v412_v47 = vsub.f32 %v1257_v37, %v387_v3 }
 0x1c5   :  { %v984_v4 = vpop.eup %983  ;;  %v434_v5 = vmul.f32 1.442695, %v412_v47 }
 0x1c6   :  { %464 = vadd.xlane.f32.xlu0 %v984_v4  ;;  %v389_v53 = vpop.xlane.xlu0 %388  ;;  %v488_v15 = vpack.c.bf16 %v984_v4, %v982_v0 }
 0x1c7   :  { %989 = vpow2.f32 %v434_v5  ;;  %v413_v41 = vsub.f32 %v1268_v8, %v389_v53 }
 0x1c8   :  { %837 = vmatprep.mubr.bf16.mxu0 %v488_v15 }
 0x1c9   :  { %v436_v9 = vmul.f32 1.442695, %v413_v41  ;;  %v986_v14 = vpop.eup %985 }
 0x1ca   :  { %v403_v59 = vpop.xlane.xlu0 %402 }
 0x1cb   :  { %991 = vpow2.f32 %v436_v9  ;;  %v420_v12 = vsub.f32 %v1275_v10, %v403_v59 }
 0x1cd   :  { %v988_v16 = vpop.eup %987  ;;  %v450_v17 = vmul.f32 1.442695, %v420_v12 }
 0x1ce   :  { %480 = vadd.xlane.f32.xlu1 %v988_v16  ;;  %v405_v18 = vpop.xlane.xlu0 %404  ;;  %v492_v37 = vpack.c.bf16 %v988_v16, %v986_v14 }
 0x1cf   :  { %v421_v19 = vsub.f32 %v1279_v23, %v405_v18  ;;  %993 = vpow2.f32 %v450_v17 }
 0x1d0   :  { %845 = vmatprep.mubr.bf16.mxu1 %v492_v37 }
 0x1d1   :  { %v990_v21 = vpop.eup %989  ;;  %v452_v22 = vmul.f32 1.442695, %v421_v19 }
 0x1d2   :  { %466 = vadd.xlane.f32.xlu0 %v990_v21 }
 0x1d3   :  { %995 = vpow2.f32 %v452_v22 }
 0x1d5   :  { %v992_v8 = vpop.eup %991 }
 0x1d6   :  { %468 = vadd.xlane.f32.xlu0 %v992_v8  ;;  %v489_v25 = vpack.c.bf16 %v992_v8, %v990_v21 }
 0x1d8   :  { %838 = vmatmul.mubr.bf16.gmra.mrb[4].mxu0 %v489_v25 }
 0x1d9   :  { %v994_v10 = vpop.eup %993 }
 0x1da   :  { %470 = vadd.xlane.f32.xlu0 %v1289_v42 }
 0x1dd   :  { %v996_v24 = vpop.eup %995 }
 0x1de   :  { %472 = vadd.xlane.f32.xlu0 %v1291_v43  ;;  %484 = vadd.xlane.f32.xlu1 %v996_v24  ;;  %v493_v26 = vpack.c.bf16 %v996_v24, %v994_v10 }
 0x1e0   :  { %846 = vmatmul.mubr.bf16.gmra.mrb[4].mxu1 %v493_v26 }
 0x1e2   :  { %474 = vadd.xlane.f32.xlu0 %v978_v58 }
 0x1e6   :  { %476 = vadd.xlane.f32.xlu0 %v980_v7 }
 0x1ea   :  { %478 = vadd.xlane.f32.xlu0 %v986_v14 }
 0x1ee   :  { %482 = vadd.xlane.f32.xlu0 %v994_v10 }
 0x22f   :  { %v455_v23 = vpop.xlane.xlu0 %454 }
 0x233   :  { %v457_v27 = vpop.xlane.xlu0 %456 }
 0x23f   :  { %v459_v56 = vpop.xlane.xlu1 %458 }
 0x240   :  { %997 = vrcp.f32 %v459_v56 }
 0x241   :  { %999 = vrcp.f32 %v455_v23 }
 0x243   :  { %v461_v29 = vpop.xlane.xlu0 %460 }
 0x244   :  { %1001 = vrcp.f32 %v461_v29 }
 0x245   :  { %1003 = vrcp.f32 %v457_v27 }
 0x24a   :  { %v998_v39 = vpop.eup %997 }
 0x24b   :  { %v1000_v42 = vpop.eup %999 }
 0x24e   :  { %v1002_v13 = vpop.eup %1001 }
 0x24f   :  { %v463_v30 = vpop.xlane.xlu0 %462  ;;  %v1004_v48 = vpop.eup %1003 }
 0x253   :  { %v465_v31 = vpop.xlane.xlu0 %464 }
 0x25b   :  { %v481_v15 = vpop.xlane.xlu1 %480 }
 0x25f   :  { %v467_v32 = vpop.xlane.xlu0 %466 }
 0x263   :  { %v469_v50 = vpop.xlane.xlu0 %468 }
 0x267   :  { %v471_v33 = vpop.xlane.xlu0 %470 }
 0x26b   :  { %v473_v36 = vpop.xlane.xlu0 %472  ;;  %v485_v9 = vpop.xlane.xlu1 %484 }
 0x26f   :  { %v475_v38 = vpop.xlane.xlu0 %474 }
 0x270   :  { %1005 = vrcp.f32 %v475_v38 }
 0x271   :  { %1007 = vrcp.f32 %v471_v33 }
 0x273   :  { %v477_v62 = vpop.xlane.xlu0 %476 }
 0x274   :  { %1009 = vrcp.f32 %v477_v62 }
 0x275   :  { %1011 = vrcp.f32 %v473_v36 }
 0x276   :  { %1013 = vrcp.f32 %v467_v32 }
 0x277   :  { %v479_v53 = vpop.xlane.xlu0 %478  ;;  %1015 = vrcp.f32 %v463_v30 }
 0x278   :  { %1017 = vrcp.f32 %v469_v50 }
 0x279   :  { %1019 = vrcp.f32 %v465_v31 }
 0x27a   :  { %v1006_v2 = vpop.eup %1005 }
 0x27b   :  { %v1008_v34 = vpop.eup %1007  ;;  %v483_v41 = vpop.xlane.xlu0 %482 }
 0x27c   :  { %1021 = vrcp.f32 %v483_v41 }
 0x27d   :  { %1023 = vrcp.f32 %v479_v53 }
 0x27e   :  { %v1010_v7 = vpop.eup %1009  ;;  %1025 = vrcp.f32 %v485_v9 }
 0x27f   :  { %v1012_v63 = vpop.eup %1011  ;;  %1027 = vrcp.f32 %v481_v15 }
 0x280   :  { %v1014_v59 = vpop.eup %1013 }
 0x281   :  { %v1016_v14 = vpop.eup %1015 }
 0x282   :  { %v1018_v18 = vpop.eup %1017 }
 0x283   :  { %v1020_v21 = vpop.eup %1019 }
 0x286   :  { %v1022_v27 = vpop.eup %1021 }
 0x287   :  { %v1024_v30 = vpop.eup %1023 }
 0x288   :  { %v1026_v50 = vpop.eup %1025 }
 0x289   :  { %v1028_v56 = vpop.eup %1027 }
 0x28b   :  { %v835_v40 = vpop.f32.mrb[0].mxu0 }
 0x28c   :  { %v657_v43 = vmul.f32 %v998_v39, %v835_v40  ;;  %v576_v44 = vpop.f32.mrb[1].mxu0 }
 0x28d   :  { %v655_v45 = vmul.f32 %v1000_v42, %v576_v44  ;;  %v836_v46 = vpop.f32.mrb[2].mxu0 }
 0x28e   :  { %v680_v20 = vadd.f32 %v1309_v6, %v657_v43  ;;  %v658_v1 = vmul.f32 %v1002_v13, %v836_v46  ;;  %v579_v28 = vpop.f32.mrb[3].mxu0 }
 0x28f   :  { %v678_v49 = vadd.f32 %v1309_v6, %v655_v45  ;;  %v656_v51 = vmul.f32 %v1004_v48, %v579_v28 }
 0x290   :  { %696 = vst [vmem:[%s1379_s4 + $0x10] sm:$0xff] %v680_v20  ;;  %v681_v52 = vadd.f32 %v1309_v6, %v658_v1 }
 0x291   :  { %694 = vst [vmem:[%s1379_s4] sm:$0xff] %v678_v49  ;;  %v679_v54 = vadd.f32 %v1309_v6, %v656_v51 }
 0x292   :  { %697 = vst [vmem:[%s1379_s4 + $0x18] sm:$0xff] %v681_v52 }
 0x293   :  { %695 = vst [vmem:[%s1379_s4 + $0x8] sm:$0xff] %v679_v54  ;;  %v843_v55 = vpop.f32.mrb[0].mxu1 }
 0x294   :  { %v665_v57 = vmul.f32 %v1006_v2, %v843_v55  ;;  %v608_v58 = vpop.f32.mrb[1].mxu1 }
 0x295   :  { %v663_v60 = vmul.f32 %v1008_v34, %v608_v58  ;;  %v844_v61 = vpop.f32.mrb[2].mxu1 }
 0x296   :  { %v688_v35 = vadd.f32 %v1309_v6, %v665_v57  ;;  %v666_v0 = vmul.f32 %v1010_v7, %v844_v61  ;;  %v611_v11 = vpop.f32.mrb[3].mxu1 }
 0x297   :  { %v686_v3 = vadd.f32 %v1309_v6, %v663_v60  ;;  %v664_v47 = vmul.f32 %v1012_v63, %v611_v11 }
 0x298   :  { %704 = vst [vmem:[%s1379_s4 + $0x50] sm:$0xff] %v688_v35  ;;  %v689_v4 = vadd.f32 %v1309_v6, %v666_v0 }
 0x299   :  { %702 = vst [vmem:[%s1379_s4 + $0x40] sm:$0xff] %v686_v3  ;;  %v687_v5 = vadd.f32 %v1309_v6, %v664_v47 }
 0x29a   :  { %705 = vst [vmem:[%s1379_s4 + $0x58] sm:$0xff] %v689_v4 }
 0x29b   :  { %703 = vst [vmem:[%s1379_s4 + $0x48] sm:$0xff] %v687_v5 }
 0x2ab   :  { %v839_v12 = vpop.f32.mrb[4].mxu0 }
 0x2ac   :  { %v661_v16 = vmul.f32 %v1014_v59, %v839_v12  ;;  %v592_v17 = vpop.f32.mrb[5].mxu0 }
 0x2ad   :  { %v659_v37 = vmul.f32 %v1016_v14, %v592_v17  ;;  %v840_v19 = vpop.f32.mrb[6].mxu0 }
 0x2ae   :  { %v684_v22 = vadd.f32 %v1309_v6, %v661_v16  ;;  %v662_v8 = vmul.f32 %v1018_v18, %v840_v19  ;;  %v595_v25 = vpop.f32.mrb[7].mxu0 }
 0x2af   :  { %v682_v10 = vadd.f32 %v1309_v6, %v659_v37  ;;  %v660_v24 = vmul.f32 %v1020_v21, %v595_v25 }
 0x2b0   :  { %700 = vst [vmem:[%s1379_s4 + $0x30] sm:$0xff] %v684_v22  ;;  %v685_v26 = vadd.f32 %v1309_v6, %v662_v8 }
 0x2b1   :  { %698 = vst [vmem:[%s1379_s4 + $0x20] sm:$0xff] %v682_v10  ;;  %v683_v23 = vadd.f32 %v1309_v6, %v660_v24 }
 0x2b2   :  { %701 = vst [vmem:[%s1379_s4 + $0x38] sm:$0xff] %v685_v26 }
 0x2b3   :  { %699 = vst [vmem:[%s1379_s4 + $0x28] sm:$0xff] %v683_v23  ;;  %v847_v29 = vpop.f32.mrb[4].mxu1 }
 0x2b4   :  { %v669_v31 = vmul.f32 %v1022_v27, %v847_v29  ;;  %v624_v32 = vpop.f32.mrb[5].mxu1 }
 0x2b5   :  { %v667_v33 = vmul.f32 %v1024_v30, %v624_v32  ;;  %v848_v36 = vpop.f32.mrb[6].mxu1 }
 0x2b6   :  { %v692_v38 = vadd.f32 %v1309_v6, %v669_v31  ;;  %v670_v62 = vmul.f32 %v1026_v50, %v848_v36  ;;  %v627_v39 = vpop.f32.mrb[7].mxu1 }
 0x2b7   :  { %v690_v40 = vadd.f32 %v1309_v6, %v667_v33  ;;  %v668_v42 = vmul.f32 %v1028_v56, %v627_v39 }
 0x2b8   :  { %708 = vst [vmem:[%s1379_s4 + $0x70] sm:$0xff] %v692_v38  ;;  %v693_v43 = vadd.f32 %v1309_v6, %v670_v62 }
 0x2b9   :  { %706 = vst [vmem:[%s1379_s4 + $0x60] sm:$0xff] %v690_v40  ;;  %v691_v44 = vadd.f32 %v1309_v6, %v668_v42 }
 0x2ba   :  { %709 = vst [vmem:[%s1379_s4 + $0x78] sm:$0xff] %v693_v43 }
 0x2bb   :  { %707 = vst [vmem:[%s1379_s4 + $0x68] sm:$0xff] %v691_v44 }

</bundles_post_ra>
